<compile_context>
chip_gen: v6e
topology: v6e:2x2x1
jax: 0.10.0
libtpu: 0.0.40
codegen_flags: <defaults>
</compile_context>

<pallas_src>
import functools

import jax
import jax.numpy as jnp
from jax import lax
from jax.experimental import pallas as pl
from jax.experimental.pallas import tpu as pltpu

PAD = 0
_NEG_BIG = -1e30  # finite "-inf" so that 0 * (-inf) never produces NaN


def _round_up(x, m):
    return (x + m - 1) // m * m


def _skipgram_kernel(emb_ref, w_ref, y_ref, out_ref,
                     m_sc, l_sc, g_sc, n_sc, *, vocab_size: int):
    # emb_ref: [TB, E]  bf16      w_ref: [TV, E] bf16
    # y_ref  : [TB, C]  int32     out_ref: [TB, 128] f32
    # scratch: m/l/g/n  [TB, 1]   f32  (running max, sumexp, gathered-sum, nonpad count)
    v_idx = pl.program_id(1)
    num_v = pl.num_programs(1)
    tile_b = emb_ref.shape[0]
    tile_v = w_ref.shape[0]
    C = y_ref.shape[1]

    y = y_ref[...]                                            # [TB, C] int32

    @pl.when(v_idx == 0)
    def _init():
        m_sc[...] = jnp.full_like(m_sc, -jnp.inf)
        l_sc[...] = jnp.zeros_like(l_sc)
        g_sc[...] = jnp.zeros_like(g_sc)
        n = jnp.zeros((tile_b, 1), jnp.float32)
        for c in range(C):                                    # pure VPU compares
            n = n + (y[:, c:c + 1] != PAD).astype(jnp.float32)
        n_sc[...] = n

    # logits for this vocab tile: bf16 x bf16 -> f32 on the MXU (trans-B contract).
    logits = lax.dot_general(
        emb_ref[...], w_ref[...],
        dimension_numbers=(((1,), (1,)), ((), ())),
        preferred_element_type=jnp.float32)                   # [TB, TV]

    # Mask vocab-padding columns (ids >= vocab_size) out of the softmax.
    base = v_idx * tile_v
    ids = base + lax.broadcasted_iota(jnp.int32, (tile_b, tile_v), 1)
    logits = jnp.where(ids < vocab_size, logits, _NEG_BIG)

    # Online logsumexp over vocab tiles (f32).
    m_prev = m_sc[...]
    m_new = jnp.maximum(m_prev, jnp.max(logits, axis=-1, keepdims=True))
    l_sc[...] = (l_sc[...] * jnp.exp(m_prev - m_new)
                 + jnp.sum(jnp.exp(logits - m_new), axis=-1, keepdims=True))
    m_sc[...] = m_new

    # Collapsed gather: count[b, v] = #context slots hitting vocab id v (non-PAD only),
    # then one cross-lane reduce of count * logits.
    count = jnp.zeros((tile_b, tile_v), jnp.float32)
    for c in range(C):                                        # C cheap VPU compares
        yc = y[:, c:c + 1]
        count = count + ((ids == yc) & (yc != PAD)).astype(jnp.float32)
    g_sc[...] += jnp.sum(count * logits, axis=-1, keepdims=True)

    @pl.when(v_idx == num_v - 1)
    def _finalize():
        lse = m_sc[...] + jnp.log(l_sc[...])                  # [TB, 1]
        # sum_c logp[b, y_c] * (y_c != PAD) == gathered_sum - n_nonpad * lse
        per_row = g_sc[...] - n_sc[...] * lse                 # [TB, 1]
        out_ref[...] = jnp.broadcast_to(per_row, out_ref.shape)  # lane-dense store


def skipgram_loss(batch_X, batch_Y, emb_table, lin_weight, *,
                  tile_b=128, tile_v=256):
    """batch_X: [B] int32, batch_Y: [B, C] int32,
       emb_table: [V, E] f32 (nn.Embedding.weight),
       lin_weight: [V, E] f32 (nn.Linear.weight, passed UN-transposed)."""
    V, E = emb_table.shape
    B = batch_X.shape[0]
    C = batch_Y.shape[1]

    # Embedding row lookup stays in the wrapper (tiny at these sizes).
    # TODO(synk): fold this gather into the kernel via scalar-prefetch once B is large.
    emb_X = emb_table[batch_X]                                # [B, E]

    tile_b = min(tile_b, _round_up(B, 8))
    tile_v = min(tile_v, _round_up(V, 128))
    B_pad = _round_up(B, tile_b)
    V_pad = _round_up(V, tile_v)

    # bf16 MXU operands (f32 accumulation inside the kernel); pad batch rows with
    # zeros / PAD targets (they contribute exactly 0) and vocab rows with zeros
    # (masked to -inf inside the kernel).
    emb_p = jnp.zeros((B_pad, E), jnp.bfloat16).at[:B].set(emb_X.astype(jnp.bfloat16))
    w_p = jnp.zeros((V_pad, E), jnp.bfloat16).at[:V].set(lin_weight.astype(jnp.bfloat16))
    y_p = jnp.full((B_pad, C), PAD, jnp.int32).at[:B].set(batch_Y.astype(jnp.int32))

    nb = B_pad // tile_b
    nv = V_pad // tile_v

    kernel = functools.partial(_skipgram_kernel, vocab_size=V)

    out = pl.pallas_call(
        kernel,
        out_shape=jax.ShapeDtypeStruct((B_pad, 128), jnp.float32),
        grid_spec=pltpu.PrefetchScalarGridSpec(
            num_scalar_prefetch=0,
            grid=(nb, nv),
            in_specs=[
                pl.BlockSpec((tile_b, E), lambda b, v: (b, 0)),   # emb rows
                pl.BlockSpec((tile_v, E), lambda b, v: (v, 0)),   # weight tile [TV, E]
                pl.BlockSpec((tile_b, C), lambda b, v: (b, 0)),   # targets
            ],
            out_specs=pl.BlockSpec((tile_b, 128), lambda b, v: (b, 0)),
            scratch_shapes=[pltpu.VMEM((tile_b, 1), jnp.float32)] * 4,
        ),
        compiler_params=pltpu.CompilerParams(
            dimension_semantics=("parallel", "arbitrary")),
    )(emb_p, w_p, y_p)

    per_row = out[:B, 0]                                      # padded rows are exactly 0
    return -(jnp.sum(per_row) / B)


if __name__ == "__main__":
    V, E = 512, 128     # vocab_size, embedding_size
    B, C = 8, 8         # batch, context window size

    key = jax.random.PRNGKey(0)
    k1, k2, k3, k4 = jax.random.split(key, 4)

    # Parameter init mimicking the PyTorch module:
    #   nn.Embedding weight ~ N(0, 1); nn.Linear weight ~ U(-1/sqrt(E), 1/sqrt(E))
    emb_table = jax.random.normal(k1, (V, E), jnp.float32)
    lin_weight = (jax.random.uniform(k2, (V, E), jnp.float32) * 2.0 - 1.0) / jnp.sqrt(E)

    batch_X = jax.random.randint(k3, (B,), 0, V, dtype=jnp.int32)
    batch_Y = jax.random.randint(k4, (B, C), 0, V, dtype=jnp.int32)
    batch_Y = batch_Y.at[:, -1].set(PAD)   # exercise the PAD masking path

    loss = skipgram_loss(batch_X, batch_Y, emb_table, lin_weight)
    loss = jax.block_until_ready(loss)

    # Pure-JAX reference with the same bf16-rounded operands (kernel feeds the MXU
    # in bf16 but keeps accumulation and softmax math in f32).
    emb_bf = emb_table.astype(jnp.bfloat16).astype(jnp.float32)
    w_bf = lin_weight.astype(jnp.bfloat16).astype(jnp.float32)
    emb = emb_bf[batch_X]
    logits = emb @ w_bf.T
    logp = jax.nn.log_softmax(logits, axis=-1)
    gathered = jnp.take_along_axis(logp, batch_Y, axis=1)
    gathered = gathered * (batch_Y != PAD).astype(jnp.float32)
    ref = -jnp.mean(jnp.sum(gathered, axis=1))

    assert jnp.allclose(loss, ref, rtol=1e-3, atol=1e-3), (float(loss), float(ref))
    print("KERNEL_OK")
</pallas_src>

<mosaic_0001>
module attributes {stable_mosaic.version = 11 : i64} {
  func.func @_skipgram_kernel(%arg0: i32, %arg1: i32, %arg2: memref<8x128xbf16, #tpu.memory_space<vmem>>, %arg3: memref<256x128xbf16, #tpu.memory_space<vmem>>, %arg4: memref<8x8xi32, #tpu.memory_space<vmem>>, %arg5: memref<8x128xf32, #tpu.memory_space<vmem>>, %arg6: memref<8x1xf32, #tpu.memory_space<vmem>>, %arg7: memref<8x1xf32, #tpu.memory_space<vmem>>, %arg8: memref<8x1xf32, #tpu.memory_space<vmem>>, %arg9: memref<8x1xf32, #tpu.memory_space<vmem>>) attributes {dimension_semantics = [#tpu.dimension_semantics<parallel>, #tpu.dimension_semantics<arbitrary>], iteration_bounds = array<i64: 1, 2>, scalar_prefetch = 0 : i64, scratch_operands = 4 : i64, tpu.core_type = #tpu.core_type<tc>, window_params = [{transform_indices = @transform_0, window_bounds = array<i64: 8, 128>}, {transform_indices = @transform_1, window_bounds = array<i64: 256, 128>}, {transform_indices = @transform_2, window_bounds = array<i64: 8, 8>}, {transform_indices = @transform_3, window_bounds = array<i64: 8, 128>}]} {
    %c0 = arith.constant 0 : index
    %c0_0 = arith.constant 0 : index
    %0 = vector.load %arg4[%c0, %c0_0] : memref<8x8xi32, #tpu.memory_space<vmem>>, vector<8x8xi32>
    %c0_i32 = arith.constant 0 : i32
    %1 = arith.cmpi eq, %arg1, %c0_i32 : i32
    %2 = arith.extui %1 : i1 to i32
    %c0_i32_1 = arith.constant 0 : i32
    %3 = arith.cmpi ne, %2, %c0_i32_1 : i32
    scf.if %3 {
      %cst_32 = arith.constant 0xFF800000 : f32
      %121 = vector.broadcast %cst_32 : f32 to vector<8x1xf32>
      %c0_33 = arith.constant 0 : index
      %c0_34 = arith.constant 0 : index
      %122 = vector.load %arg6[%c0_33, %c0_34] : memref<8x1xf32, #tpu.memory_space<vmem>>, vector<8x1xf32>
      tpu.vector_store %arg6[%c0_33, %c0_34], %121 {strides = array<i32>} : memref<8x1xf32, #tpu.memory_space<vmem>>, vector<8x1xf32>,
      %cst_35 = arith.constant 0.000000e+00 : f32
      %123 = vector.broadcast %cst_35 : f32 to vector<8x1xf32>
      %c0_36 = arith.constant 0 : index
      %c0_37 = arith.constant 0 : index
      %124 = vector.load %arg7[%c0_36, %c0_37] : memref<8x1xf32, #tpu.memory_space<vmem>>, vector<8x1xf32>
      tpu.vector_store %arg7[%c0_36, %c0_37], %123 {strides = array<i32>} : memref<8x1xf32, #tpu.memory_space<vmem>>, vector<8x1xf32>,
      %cst_38 = arith.constant 0.000000e+00 : f32
      %125 = vector.broadcast %cst_38 : f32 to vector<8x1xf32>
      %c0_39 = arith.constant 0 : index
      %c0_40 = arith.constant 0 : index
      %126 = vector.load %arg8[%c0_39, %c0_40] : memref<8x1xf32, #tpu.memory_space<vmem>>, vector<8x1xf32>
      tpu.vector_store %arg8[%c0_39, %c0_40], %125 {strides = array<i32>} : memref<8x1xf32, #tpu.memory_space<vmem>>, vector<8x1xf32>,
      %cst_41 = arith.constant 0.000000e+00 : f32
      %127 = vector.broadcast %cst_41 : f32 to vector<8x1xf32>
      %128 = vector.extract_strided_slice %0 {offsets = [0, 0], sizes = [8, 1], strides = [1, 1]} : vector<8x8xi32> to vector<8x1xi32>
      %c0_i32_42 = arith.constant 0 : i32
      %129 = vector.broadcast %c0_i32_42 : i32 to vector<8x1xi32>
      %130 = arith.cmpi ne, %128, %129 : vector<8x1xi32>
      %131 = arith.extui %130 : vector<8x1xi1> to vector<8x1xi32>
      %132 = arith.sitofp %131 : vector<8x1xi32> to vector<8x1xf32>
      %133 = arith.addf %127, %132 : vector<8x1xf32>
      %134 = vector.extract_strided_slice %0 {offsets = [0, 1], sizes = [8, 1], strides = [1, 1]} : vector<8x8xi32> to vector<8x1xi32>
      %c0_i32_43 = arith.constant 0 : i32
      %135 = vector.broadcast %c0_i32_43 : i32 to vector<8x1xi32>
      %136 = arith.cmpi ne, %134, %135 : vector<8x1xi32>
      %137 = arith.extui %136 : vector<8x1xi1> to vector<8x1xi32>
      %138 = arith.sitofp %137 : vector<8x1xi32> to vector<8x1xf32>
      %139 = arith.addf %133, %138 : vector<8x1xf32>
      %140 = vector.extract_strided_slice %0 {offsets = [0, 2], sizes = [8, 1], strides = [1, 1]} : vector<8x8xi32> to vector<8x1xi32>
      %c0_i32_44 = arith.constant 0 : i32
      %141 = vector.broadcast %c0_i32_44 : i32 to vector<8x1xi32>
      %142 = arith.cmpi ne, %140, %141 : vector<8x1xi32>
      %143 = arith.extui %142 : vector<8x1xi1> to vector<8x1xi32>
      %144 = arith.sitofp %143 : vector<8x1xi32> to vector<8x1xf32>
      %145 = arith.addf %139, %144 : vector<8x1xf32>
      %146 = vector.extract_strided_slice %0 {offsets = [0, 3], sizes = [8, 1], strides = [1, 1]} : vector<8x8xi32> to vector<8x1xi32>
      %c0_i32_45 = arith.constant 0 : i32
      %147 = vector.broadcast %c0_i32_45 : i32 to vector<8x1xi32>
      %148 = arith.cmpi ne, %146, %147 : vector<8x1xi32>
      %149 = arith.extui %148 : vector<8x1xi1> to vector<8x1xi32>
      %150 = arith.sitofp %149 : vector<8x1xi32> to vector<8x1xf32>
      %151 = arith.addf %145, %150 : vector<8x1xf32>
      %152 = vector.extract_strided_slice %0 {offsets = [0, 4], sizes = [8, 1], strides = [1, 1]} : vector<8x8xi32> to vector<8x1xi32>
      %c0_i32_46 = arith.constant 0 : i32
      %153 = vector.broadcast %c0_i32_46 : i32 to vector<8x1xi32>
      %154 = arith.cmpi ne, %152, %153 : vector<8x1xi32>
      %155 = arith.extui %154 : vector<8x1xi1> to vector<8x1xi32>
      %156 = arith.sitofp %155 : vector<8x1xi32> to vector<8x1xf32>
      %157 = arith.addf %151, %156 : vector<8x1xf32>
      %158 = vector.extract_strided_slice %0 {offsets = [0, 5], sizes = [8, 1], strides = [1, 1]} : vector<8x8xi32> to vector<8x1xi32>
      %c0_i32_47 = arith.constant 0 : i32
      %159 = vector.broadcast %c0_i32_47 : i32 to vector<8x1xi32>
      %160 = arith.cmpi ne, %158, %159 : vector<8x1xi32>
      %161 = arith.extui %160 : vector<8x1xi1> to vector<8x1xi32>
      %162 = arith.sitofp %161 : vector<8x1xi32> to vector<8x1xf32>
      %163 = arith.addf %157, %162 : vector<8x1xf32>
      %164 = vector.extract_strided_slice %0 {offsets = [0, 6], sizes = [8, 1], strides = [1, 1]} : vector<8x8xi32> to vector<8x1xi32>
      %c0_i32_48 = arith.constant 0 : i32
      %165 = vector.broadcast %c0_i32_48 : i32 to vector<8x1xi32>
      %166 = arith.cmpi ne, %164, %165 : vector<8x1xi32>
      %167 = arith.extui %166 : vector<8x1xi1> to vector<8x1xi32>
      %168 = arith.sitofp %167 : vector<8x1xi32> to vector<8x1xf32>
      %169 = arith.addf %163, %168 : vector<8x1xf32>
      %170 = vector.extract_strided_slice %0 {offsets = [0, 7], sizes = [8, 1], strides = [1, 1]} : vector<8x8xi32> to vector<8x1xi32>
      %c0_i32_49 = arith.constant 0 : i32
      %171 = vector.broadcast %c0_i32_49 : i32 to vector<8x1xi32>
      %172 = arith.cmpi ne, %170, %171 : vector<8x1xi32>
      %173 = arith.extui %172 : vector<8x1xi1> to vector<8x1xi32>
      %174 = arith.sitofp %173 : vector<8x1xi32> to vector<8x1xf32>
      %175 = arith.addf %169, %174 : vector<8x1xf32>
      %c0_50 = arith.constant 0 : index
      %c0_51 = arith.constant 0 : index
      %176 = vector.load %arg9[%c0_50, %c0_51] : memref<8x1xf32, #tpu.memory_space<vmem>>, vector<8x1xf32>
      tpu.vector_store %arg9[%c0_50, %c0_51], %175 {strides = array<i32>} : memref<8x1xf32, #tpu.memory_space<vmem>>, vector<8x1xf32>,
    } else {
    }
    %c0_2 = arith.constant 0 : index
    %c0_3 = arith.constant 0 : index
    %4 = vector.load %arg2[%c0_2, %c0_3] : memref<8x128xbf16, #tpu.memory_space<vmem>>, vector<8x128xbf16>
    %c0_4 = arith.constant 0 : index
    %c0_5 = arith.constant 0 : index
    %5 = vector.load %arg3[%c0_4, %c0_5] : memref<256x128xbf16, #tpu.memory_space<vmem>>, vector<256x128xbf16>
    %cst = arith.constant dense<0.000000e+00> : vector<8x256xf32>
    %6 = tpu.matmul %4, %5, %cst {dimension_numbers = #tpu.dot_dimension_numbers<[1], [1], [0], [0], [0, 0, 1, 0], [], []>} : vector<8x128xbf16>, vector<256x128xbf16>, vector<8x256xf32> -> vector<8x256xf32>
    %c256_i32 = arith.constant 256 : i32
    %7 = arith.muli %arg1, %c256_i32 : i32
    %8 = tpu.iota {dimensions = array<i32: 1>} : vector<8x256xi32>
    %9 = vector.broadcast %7 : i32 to vector<8x256xi32>
    %10 = arith.addi %9, %8 : vector<8x256xi32>
    %c512_i32 = arith.constant 512 : i32
    %11 = vector.broadcast %c512_i32 : i32 to vector<8x256xi32>
    %12 = arith.cmpi slt, %10, %11 : vector<8x256xi32>
    %cst_6 = arith.constant -1.000000e+30 : f32
    %13 = vector.broadcast %cst_6 : f32 to vector<8x256xf32>
    %14 = arith.select %12, %6, %13 : vector<8x256xi1>, vector<8x256xf32>
    %c0_7 = arith.constant 0 : index
    %c0_8 = arith.constant 0 : index
    %15 = vector.load %arg6[%c0_7, %c0_8] : memref<8x1xf32, #tpu.memory_space<vmem>>, vector<8x1xf32>
    %cst_9 = arith.constant dense<0xFF800000> : vector<8xf32>
    %16 = vector.multi_reduction <maximumf>, %14, %cst_9 [1] : vector<8x256xf32> to vector<8xf32>
    %17 = vector.shape_cast %16 : vector<8xf32> to vector<8x1xf32>
    %18 = arith.maximumf %15, %17 : vector<8x1xf32>
    %c0_10 = arith.constant 0 : index
    %c0_11 = arith.constant 0 : index
    %19 = vector.load %arg7[%c0_10, %c0_11] : memref<8x1xf32, #tpu.memory_space<vmem>>, vector<8x1xf32>
    %20 = arith.subf %15, %18 : vector<8x1xf32>
    %21 = math.exp %20 : vector<8x1xf32>
    %22 = arith.mulf %19, %21 : vector<8x1xf32>
    %23 = vector.broadcast %18 : vector<8x1xf32> to vector<8x256xf32>
    %24 = arith.subf %14, %23 : vector<8x256xf32>
    %25 = math.exp %24 : vector<8x256xf32>
    %cst_12 = arith.constant dense<0.000000e+00> : vector<8xf32>
    %26 = vector.multi_reduction <add>, %25, %cst_12 [1] : vector<8x256xf32> to vector<8xf32>
    %27 = vector.shape_cast %26 : vector<8xf32> to vector<8x1xf32>
    %28 = arith.addf %22, %27 : vector<8x1xf32>
    %c0_13 = arith.constant 0 : index
    %c0_14 = arith.constant 0 : index
    %29 = vector.load %arg7[%c0_13, %c0_14] : memref<8x1xf32, #tpu.memory_space<vmem>>, vector<8x1xf32>
    tpu.vector_store %arg7[%c0_13, %c0_14], %28 {strides = array<i32>} : memref<8x1xf32, #tpu.memory_space<vmem>>, vector<8x1xf32>,
    %c0_15 = arith.constant 0 : index
    %c0_16 = arith.constant 0 : index
    %30 = vector.load %arg6[%c0_15, %c0_16] : memref<8x1xf32, #tpu.memory_space<vmem>>, vector<8x1xf32>
    tpu.vector_store %arg6[%c0_15, %c0_16], %18 {strides = array<i32>} : memref<8x1xf32, #tpu.memory_space<vmem>>, vector<8x1xf32>,
    %cst_17 = arith.constant 0.000000e+00 : f32
    %31 = vector.broadcast %cst_17 : f32 to vector<8x256xf32>
    %32 = vector.extract_strided_slice %0 {offsets = [0, 0], sizes = [8, 1], strides = [1, 1]} : vector<8x8xi32> to vector<8x1xi32>
    %33 = vector.broadcast %32 : vector<8x1xi32> to vector<8x256xi32>
    %34 = arith.cmpi eq, %10, %33 : vector<8x256xi32>
    %c0_i32_18 = arith.constant 0 : i32
    %35 = vector.broadcast %c0_i32_18 : i32 to vector<8x1xi32>
    %36 = arith.cmpi ne, %32, %35 : vector<8x1xi32>
    %37 = vector.broadcast %36 : vector<8x1xi1> to vector<8x256xi1>
    %38 = arith.andi %34, %37 : vector<8x256xi1>
    %39 = arith.extui %38 : vector<8x256xi1> to vector<8x256xi32>
    %40 = arith.sitofp %39 : vector<8x256xi32> to vector<8x256xf32>
    %41 = arith.addf %31, %40 : vector<8x256xf32>
    %42 = vector.extract_strided_slice %0 {offsets = [0, 1], sizes = [8, 1], strides = [1, 1]} : vector<8x8xi32> to vector<8x1xi32>
    %43 = vector.broadcast %42 : vector<8x1xi32> to vector<8x256xi32>
    %44 = arith.cmpi eq, %10, %43 : vector<8x256xi32>
    %c0_i32_19 = arith.constant 0 : i32
    %45 = vector.broadcast %c0_i32_19 : i32 to vector<8x1xi32>
    %46 = arith.cmpi ne, %42, %45 : vector<8x1xi32>
    %47 = vector.broadcast %46 : vector<8x1xi1> to vector<8x256xi1>
    %48 = arith.andi %44, %47 : vector<8x256xi1>
    %49 = arith.extui %48 : vector<8x256xi1> to vector<8x256xi32>
    %50 = arith.sitofp %49 : vector<8x256xi32> to vector<8x256xf32>
    %51 = arith.addf %41, %50 : vector<8x256xf32>
    %52 = vector.extract_strided_slice %0 {offsets = [0, 2], sizes = [8, 1], strides = [1, 1]} : vector<8x8xi32> to vector<8x1xi32>
    %53 = vector.broadcast %52 : vector<8x1xi32> to vector<8x256xi32>
    %54 = arith.cmpi eq, %10, %53 : vector<8x256xi32>
    %c0_i32_20 = arith.constant 0 : i32
    %55 = vector.broadcast %c0_i32_20 : i32 to vector<8x1xi32>
    %56 = arith.cmpi ne, %52, %55 : vector<8x1xi32>
    %57 = vector.broadcast %56 : vector<8x1xi1> to vector<8x256xi1>
    %58 = arith.andi %54, %57 : vector<8x256xi1>
    %59 = arith.extui %58 : vector<8x256xi1> to vector<8x256xi32>
    %60 = arith.sitofp %59 : vector<8x256xi32> to vector<8x256xf32>
    %61 = arith.addf %51, %60 : vector<8x256xf32>
    %62 = vector.extract_strided_slice %0 {offsets = [0, 3], sizes = [8, 1], strides = [1, 1]} : vector<8x8xi32> to vector<8x1xi32>
    %63 = vector.broadcast %62 : vector<8x1xi32> to vector<8x256xi32>
    %64 = arith.cmpi eq, %10, %63 : vector<8x256xi32>
    %c0_i32_21 = arith.constant 0 : i32
    %65 = vector.broadcast %c0_i32_21 : i32 to vector<8x1xi32>
    %66 = arith.cmpi ne, %62, %65 : vector<8x1xi32>
    %67 = vector.broadcast %66 : vector<8x1xi1> to vector<8x256xi1>
    %68 = arith.andi %64, %67 : vector<8x256xi1>
    %69 = arith.extui %68 : vector<8x256xi1> to vector<8x256xi32>
    %70 = arith.sitofp %69 : vector<8x256xi32> to vector<8x256xf32>
    %71 = arith.addf %61, %70 : vector<8x256xf32>
    %72 = vector.extract_strided_slice %0 {offsets = [0, 4], sizes = [8, 1], strides = [1, 1]} : vector<8x8xi32> to vector<8x1xi32>
    %73 = vector.broadcast %72 : vector<8x1xi32> to vector<8x256xi32>
    %74 = arith.cmpi eq, %10, %73 : vector<8x256xi32>
    %c0_i32_22 = arith.constant 0 : i32
    %75 = vector.broadcast %c0_i32_22 : i32 to vector<8x1xi32>
    %76 = arith.cmpi ne, %72, %75 : vector<8x1xi32>
    %77 = vector.broadcast %76 : vector<8x1xi1> to vector<8x256xi1>
    %78 = arith.andi %74, %77 : vector<8x256xi1>
    %79 = arith.extui %78 : vector<8x256xi1> to vector<8x256xi32>
    %80 = arith.sitofp %79 : vector<8x256xi32> to vector<8x256xf32>
    %81 = arith.addf %71, %80 : vector<8x256xf32>
    %82 = vector.extract_strided_slice %0 {offsets = [0, 5], sizes = [8, 1], strides = [1, 1]} : vector<8x8xi32> to vector<8x1xi32>
    %83 = vector.broadcast %82 : vector<8x1xi32> to vector<8x256xi32>
    %84 = arith.cmpi eq, %10, %83 : vector<8x256xi32>
    %c0_i32_23 = arith.constant 0 : i32
    %85 = vector.broadcast %c0_i32_23 : i32 to vector<8x1xi32>
    %86 = arith.cmpi ne, %82, %85 : vector<8x1xi32>
    %87 = vector.broadcast %86 : vector<8x1xi1> to vector<8x256xi1>
    %88 = arith.andi %84, %87 : vector<8x256xi1>
    %89 = arith.extui %88 : vector<8x256xi1> to vector<8x256xi32>
    %90 = arith.sitofp %89 : vector<8x256xi32> to vector<8x256xf32>
    %91 = arith.addf %81, %90 : vector<8x256xf32>
    %92 = vector.extract_strided_slice %0 {offsets = [0, 6], sizes = [8, 1], strides = [1, 1]} : vector<8x8xi32> to vector<8x1xi32>
    %93 = vector.broadcast %92 : vector<8x1xi32> to vector<8x256xi32>
    %94 = arith.cmpi eq, %10, %93 : vector<8x256xi32>
    %c0_i32_24 = arith.constant 0 : i32
    %95 = vector.broadcast %c0_i32_24 : i32 to vector<8x1xi32>
    %96 = arith.cmpi ne, %92, %95 : vector<8x1xi32>
    %97 = vector.broadcast %96 : vector<8x1xi1> to vector<8x256xi1>
    %98 = arith.andi %94, %97 : vector<8x256xi1>
    %99 = arith.extui %98 : vector<8x256xi1> to vector<8x256xi32>
    %100 = arith.sitofp %99 : vector<8x256xi32> to vector<8x256xf32>
    %101 = arith.addf %91, %100 : vector<8x256xf32>
    %102 = vector.extract_strided_slice %0 {offsets = [0, 7], sizes = [8, 1], strides = [1, 1]} : vector<8x8xi32> to vector<8x1xi32>
    %103 = vector.broadcast %102 : vector<8x1xi32> to vector<8x256xi32>
    %104 = arith.cmpi eq, %10, %103 : vector<8x256xi32>
    %c0_i32_25 = arith.constant 0 : i32
    %105 = vector.broadcast %c0_i32_25 : i32 to vector<8x1xi32>
    %106 = arith.cmpi ne, %102, %105 : vector<8x1xi32>
    %107 = vector.broadcast %106 : vector<8x1xi1> to vector<8x256xi1>
    %108 = arith.andi %104, %107 : vector<8x256xi1>
    %109 = arith.extui %108 : vector<8x256xi1> to vector<8x256xi32>
    %110 = arith.sitofp %109 : vector<8x256xi32> to vector<8x256xf32>
    %111 = arith.addf %101, %110 : vector<8x256xf32>
    %c0_26 = arith.constant 0 : index
    %c0_27 = arith.constant 0 : index
    %112 = vector.load %arg8[%c0_26, %c0_27] : memref<8x1xf32, #tpu.memory_space<vmem>>, vector<8x1xf32>
    %113 = arith.mulf %111, %14 : vector<8x256xf32>
    %cst_28 = arith.constant dense<0.000000e+00> : vector<8xf32>
    %114 = vector.multi_reduction <add>, %113, %cst_28 [1] : vector<8x256xf32> to vector<8xf32>
    %115 = vector.shape_cast %114 : vector<8xf32> to vector<8x1xf32>
    %116 = arith.addf %112, %115 : vector<8x1xf32>
    %c0_29 = arith.constant 0 : index
    %c0_30 = arith.constant 0 : index
    %117 = vector.load %arg8[%c0_29, %c0_30] : memref<8x1xf32, #tpu.memory_space<vmem>>, vector<8x1xf32>
    tpu.vector_store %arg8[%c0_29, %c0_30], %116 {strides = array<i32>} : memref<8x1xf32, #tpu.memory_space<vmem>>, vector<8x1xf32>,
    %c1_i32 = arith.constant 1 : i32
    %118 = arith.cmpi eq, %arg1, %c1_i32 : i32
    %119 = arith.extui %118 : i1 to i32
    %c0_i32_31 = arith.constant 0 : i32
    %120 = arith.cmpi ne, %119, %c0_i32_31 : i32
    scf.if %120 {
      %c0_32 = arith.constant 0 : index
      %c0_33 = arith.constant 0 : index
      %121 = vector.load %arg6[%c0_32, %c0_33] : memref<8x1xf32, #tpu.memory_space<vmem>>, vector<8x1xf32>
      %c0_34 = arith.constant 0 : index
      %c0_35 = arith.constant 0 : index
      %122 = vector.load %arg7[%c0_34, %c0_35] : memref<8x1xf32, #tpu.memory_space<vmem>>, vector<8x1xf32>
      %123 = math.log %122 : vector<8x1xf32>
      %124 = arith.addf %121, %123 : vector<8x1xf32>
      %c0_36 = arith.constant 0 : index
      %c0_37 = arith.constant 0 : index
      %125 = vector.load %arg8[%c0_36, %c0_37] : memref<8x1xf32, #tpu.memory_space<vmem>>, vector<8x1xf32>
      %c0_38 = arith.constant 0 : index
      %c0_39 = arith.constant 0 : index
      %126 = vector.load %arg9[%c0_38, %c0_39] : memref<8x1xf32, #tpu.memory_space<vmem>>, vector<8x1xf32>
      %127 = arith.mulf %126, %124 : vector<8x1xf32>
      %128 = arith.subf %125, %127 : vector<8x1xf32>
      %129 = vector.shape_cast %128 : vector<8x1xf32> to vector<8x1xf32>
      %130 = vector.broadcast %129 : vector<8x1xf32> to vector<8x128xf32>
      %c0_40 = arith.constant 0 : index
      %c0_41 = arith.constant 0 : index
      %131 = vector.load %arg5[%c0_40, %c0_41] : memref<8x128xf32, #tpu.memory_space<vmem>>, vector<8x128xf32>
      tpu.vector_store %arg5[%c0_40, %c0_41], %130 {strides = array<i32>} : memref<8x128xf32, #tpu.memory_space<vmem>>, vector<8x128xf32>,
    } else {
    }
    return
  }
  func.func @transform_0(%arg0: i32, %arg1: i32) -> (i32, i32) {
    %c0_i32 = arith.constant 0 : i32
    %c0_i32_0 = arith.constant 0 : i32
    return %arg0, %c0_i32 : i32, i32
  }
  func.func @transform_1(%arg0: i32, %arg1: i32) -> (i32, i32) {
    %c0_i32 = arith.constant 0 : i32
    %c0_i32_0 = arith.constant 0 : i32
    return %arg1, %c0_i32 : i32, i32
  }
  func.func @transform_2(%arg0: i32, %arg1: i32) -> (i32, i32) {
    %c0_i32 = arith.constant 0 : i32
    %c0_i32_0 = arith.constant 0 : i32
    return %arg0, %c0_i32 : i32, i32
  }
  func.func @transform_3(%arg0: i32, %arg1: i32) -> (i32, i32) {
    %c0_i32 = arith.constant 0 : i32
    %c0_i32_0 = arith.constant 0 : i32
    return %arg0, %c0_i32 : i32, i32
  }
}

</mosaic_0001>

<bundles_post_ra>
// kernel: tpu_custom_call.1
= control target key start
LH: loop header
LB: loop body
LE: loop exit
PB: predicated region body
PF: predicated region fallthrough
CT: control target
= control target key end

     0   :  { %8 = vsyncpa [#allocation7], 0  ;;  %s1419_s0 = inlined_call_operand.hbm [shape: bf16[8,128], index: 0, kind: input, shape index: {}]   ;;  %s1420_s1 = inlined_call_operand.hbm [shape: bf16[512,128], index: 1, kind: input, shape index: {}]   ;;  %s1421_s2 = inlined_call_operand.hbm [shape: s32[8,8], index: 2, kind: input, shape index: {}]   ;;  %s1422_s3 = inlined_call_operand.hbm [shape: f32[8,128], index: 3, kind: output, shape index: {}]  }
   0x1   :  { %9 = vsyncpa [#allocation10], 0 }
   0x2   :  { %11 = vsyncpa [#allocation10 + $0x1], 0 }
   0x3   :  { %12 = vsyncpa [#allocation8], 0  ;;  %s1173_s12 = smov 0   ;;  %s1175_s13 = smov 0  }
   0x4   :  { %s1177_s14 = smov 0   ;;  %s1179_s15 = smov 0  }
   0x5   :  { %s1181_s16 = smov 0   ;;  %s1183_s17 = smov 0  }
   0x6 LB: > { %s1202_s18 = sadd.s32 4294967295, %s1126_s17   ;;  %s63_s19 = sadd.s32 1, %s1114_s14  ;;  %s1126_s17 = sphi %s1183_s17, %s18_s17   ;;  %s1122_s16 = sphi %s1181_s16, %s1440_s16   ;;  %s1118_s15 = sphi %s1179_s15, %s1439_s15   ;;  %s1114_s14 = sphi %s1177_s14, %s1438_s14   ;;  %s1110_s13 = sphi %s1175_s13, %s1437_s13   ;;  %s1106_s12 = sphi %s1173_s12, %s1436_s12  }
   0x7   : > { %p70_p0 = scmp.ne.s32.totalorder %s1114_s14, %s1110_s13  ;;  %p71_p1 = scmp.eq.s32.totalorder %s1126_s17, 0 }
   0x8   : > { %p76_p2 = scmp.ne.s32.totalorder %s1110_s13, %s1106_s12  ;;  %p1423_p3 = scmp.eq.s32.totalorder %s1202_s18, 0 }
   0x9   : > { %p72_p4 = por %p71_p1, %p70_p0  ;;  %p748_p5 = scmp.ge.s32.totalorder %s1126_s17, 1 }
   0xa   : > { %p1213_p6 = por %p1423_p3, %p76_p2  ;;  %p139_p7 = scmp.lt.s32.totalorder %s1126_s17, 3 }
   0xb   : > { %s1128_s22 = smov [#allocation11]   ;;  %p845_p10 = scmp.lt.s32.totalorder %s1126_s17, 2 }
   0xc   : > { %s1426_s20 = scalar_select %p1213_p6, 1, 0 }
   0xd   : > { %p1218_p8 = pnand %p748_p5, %p139_p7  ;;  %s167_s23 = sshll.u32 %s1128_s22, 4  ;;  %s168_s23 = int_to_ptr.vmem [resolvable:$true] %s167_s23 }
   0xe   : > { %p1231_p12 = pnand %p845_p10, %p72_p4  ;;  %s1129_s26 = smov [#allocation6]  }
   0xf   : > { %s1427_s21 = scalar_select %p1218_p8, 1, 0 }
  0x10   : > { %p832_p9 = pneg %p1218_p8  ;;  %s154_s27 = sshll.u32 %s1129_s26, 4  ;;  %s155_s27 = int_to_ptr.vmem [resolvable:$true] %s154_s27 }
  0x11   : > { %s971_s28 = scalar_lea.vmem %s168_s23, 128  ;;  %p979_p5 = scmp.lt.s32.totalorder %s168_s23, %s168_s23 }
  0x12   : > { %p1227_p11 = pnand %p832_p9, %p1423_p3  ;;  %p972_p0 = scmp.ne.s32.totalorder %s168_s23, %s971_s28 }
  0x13   : > { %p980_p7 = scmp.lt.s32.totalorder %s971_s28, %s971_s28 }
  0x14   : > { %p962_p13 = pneg %p1227_p11 }
  0x15   : > { %p981_p9 = por %p980_p7, %p979_p5 }
  0x16   : > { %p974_p1 = pnand %p972_p0, %p962_p13 }
  0x18   : > { %p975_p2 = pneg %p974_p1 }
  0x1a   : > { %p982_p3 = pnand %p981_p9, %p975_p2 }
  0x1c   : > { %985 = shalt.err (!%p982_p3)
}
  0x1d   : > { %838 = dma.hbm_to_vmem [thread:$0]  (!%p1227_p11), %s1421_s2, 128, %s168_s23, [#allocation10]  }
  0x1e   : > { %s997_s4 = scalar_lea.vmem %s155_s27, 64  ;;  %p1005_p1 = scmp.lt.s32.totalorder %s155_s27, %s155_s27 }
  0x1f   : > { %p998_p4 = scmp.ne.s32.totalorder %s155_s27, %s997_s4  ;;  %p1006_p6 = scmp.lt.s32.totalorder %s997_s4, %s997_s4 }
  0x21   : > { %p1000_p10 = pnand %p998_p4, %p962_p13  ;;  %p1007_p8 = por %p1006_p6, %p1005_p1 }
  0x23   : > { %p1001_p0 = pneg %p1000_p10 }
  0x25   : > { %p1008_p5 = pnand %p1007_p8, %p1001_p0 }
  0x27   : > { %1011 = shalt.err (!%p1008_p5)
}
  0x28   : > { %835 = dma.hbm_to_vmem [thread:$0]  (!%p1227_p11), %s1419_s0, 64, %s155_s27, [#allocation7]  }
  0x29   : > { %s178_s7 = sand.u32 1, %s1126_s17   ;;  %s27_s8 = sadd.s32 1, %s1122_s16 }
  0x2a   : > { %p28_p3 = scmp.ge.s32.totalorder %s27_s8, 2  ;;  %s180_s9 = sand.u32 1, %s1114_s14  }
  0x2b   : > { %s752_s10 = sshll.u32 %s180_s9, 7  ;;  %s799_s11 = sshll.u32 %s1122_s16, 11 }
  0x2c   : > { %s1442_s8 = smov (%p28_p3, %s27_s8), 0  ;;  %s188_s23 = scalar_lea.hbm %s1420_s1, %s799_s11 }
  0x2d   : > { %s60_s24 = ssub.s32 %s1122_s16, %s1442_s8  ;;  %s182_s26 = scalar_lea.vmem [#allocation9], %s752_s10 }
  0x2e   : > { %s189_s28 = sshll.u32 %s182_s26, 4  ;;  %p61_p6 = scmp.eq.s32.totalorder %s60_s24, 0  ;;  %s190_s28 = int_to_ptr.vmem [resolvable:$true] %s189_s28 }
  0x2f   : > { %s179_s29 = scalar_lea.sflag [#allocation10], %s178_s7  ;;  %p1014_p8 = pneg %p1231_p12 }
  0x30   : > { %s1267_s27 = scalar_select %p61_p6, %s1114_s14, %s63_s19  }
  0x31   : > { %s1025_s30 = scalar_lea.vmem %s190_s28, 2048  ;;  %s1130_s4 = smov [#allocation9]  }
  0x32   : > { %p1026_p11 = scmp.ne.s32.totalorder %s190_s28, %s1025_s30  ;;  %s1030_s5 = sshll.u32 %s1130_s4, 4  ;;  %s1031_s5 = int_to_ptr.vmem [resolvable:$false] %s1030_s5 }
  0x33   : > { %s1032_s6 = scalar_lea.vmem %s1031_s5, 4096  ;;  %p1033_p7 = scmp.lt.s32.totalorder %s190_s28, %s1031_s5 }
  0x34   : > { %p1028_p13 = pnand %p1026_p11, %p1014_p8  ;;  %p1034_p9 = scmp.lt.s32.totalorder %s1032_s6, %s1025_s30 }
  0x36   : > { %p1029_p2 = pneg %p1028_p13  ;;  %p1035_p4 = por %p1034_p9, %p1033_p7 }
  0x38   : > { %p1036_p10 = pnand %p1035_p4, %p1029_p2 }
  0x3a   : > { %1039 = shalt.err (!%p1036_p10)
}
  0x3b   : > { %s1131_s9 = smov 64   ;;  %s1132_s19 = smov 4  }
  0x3c   : > { %842 = dma.hbm_to_vmem [thread:$0]  (!%p1231_p12), %s188_s23, 2048, %s190_s28, %s179_s29, %s1131_s9, %s1131_s9, %s1132_s19  }
  0x3d   : > { %p1430_p0 = scmp.ne.s32.totalorder %s1427_s21, 0 }
  0x3e   : > { %p1431_p1 = scmp.eq.s32.totalorder (!%p1430_p0), %s1202_s18, 0 }
  0x3f   : > { %201 = sbr.rel (%p1430_p0) target bundleno = 1076 (0x434), region = 32 }
  0x44   : > { %1089 = dma.done.wait (%p1431_p1), [#allocation7], 64   ;;  %p1432_p5 = pmov %p1431_p1 }
  0x45   : > { %s207_s7 = sand.u32 1, %s1202_s18   ;;  %s209_s10 = sand.u32 1, %s1110_s13  }
  0x46   : > { %1091 = vsyncadd (%p1432_p5), [#allocation7], 4294967232  ;;  %s757_s11 = sshll.u32 %s209_s10, 7  ;;  %s208_s12 = scalar_lea.sflag [#allocation10], %s207_s7 }
  0x47   : > { %s1281_s22 = scalar_lea.vmem [#allocation9], %s757_s11  ;;  %p1433_p3 = scmp.ne.s32.totalorder %s1426_s20, 0 }
  0x49   : > { %1093 = dma.done.wait (%p1433_p3), %s208_s12, 2048  }
  0x4a   : > { %1095 = vsyncadd (%p1433_p3), %s208_s12, 4294965248  ;;  %p1434_p12 = pmov %p1431_p1 }
  0x4b   : > { %p1435_p6 = pmov %p1431_p1 }
  0x4c   : > { %1097 = dma.done.wait (%p1434_p12), [#allocation10], 128  }
  0x4d   : > { %1099 = vsyncadd (%p1435_p6), [#allocation10], 4294967168  ;;  %v1291_v0 = vld [vmem:[#allocation11] sm:$0xff]  ;;  %p759_p8 = scmp.ne.s32.totalorder %s1118_s15, 0 }
  0x4e   : > { %s1134_s21 = smov (!%p759_p8), 127   ;;  %s1135_s20 = smov (!%p759_p8), 125  }
  0x4f   : > { %239 = sbr.rel (%p759_p8) target bundleno = 218 (0xda), region = 48  ;;  %s1137_s25 = smov (!%p759_p8), 126  }
  0x50   : > { %s1138_s23 = smov (!%p759_p8), 124   ;;  %s1139_s24 = smov (!%p759_p8), 123  }
  0x51   : > { %s1140_s26 = smov (!%p759_p8), 122   ;;  %s1141_s28 = smov (!%p759_p8), 121  }
  0x54   : > { %vm244_vm0 = vcmp.ne.s32.totalorder %v1291_v0, 0  ;;  %v1133_v1 = vmov 0.0   ;;  %vm240_vm1 = vcmask 7168   ;;  %v1136_v3 = vmov -inf  }
  0x55   : > { %v760_v2 = vsel %vm244_vm0, 1.0, %v1133_v1  ;;  %241 = vst.msk [vmem:[#allocation2] sm:$0xff] %vm240_vm1, %v1136_v3  ;;  %242 = vst.msk [vmem:[#allocation3] sm:$0xff] %vm240_vm1, %v1133_v1 }
  0x56   : > { %249 = vrot.lane.b32.xlu0 %v760_v2, %s1134_s21  ;;  %257 = vrot.lane.b32.xlu1 %v760_v2, %s1135_s20  ;;  %243 = vst.msk [vmem:[#allocation4] sm:$0xff] %vm240_vm1, %v1133_v1 }
  0x5a   : > { %253 = vrot.lane.b32.xlu0 %v760_v2, %s1137_s25  ;;  %261 = vrot.lane.b32.xlu1 %v760_v2, %s1138_s23 }
  0x5e   : > { %265 = vrot.lane.b32.xlu0 %v760_v2, %s1139_s24  ;;  %269 = vrot.lane.b32.xlu1 %v760_v2, %s1140_s26 }
  0x62   : > { %273 = vrot.lane.b32.xlu0 %v760_v2, %s1141_s28 }
  0xc8   : > { %v250_v4 = vpop.permute.xlu0 %249  ;;  %v258_v5 = vpop.permute.xlu1 %257 }
  0xc9   : > { %v252_v6 = vadd.f32 %v760_v2, %v250_v4 }
  0xcc   : > { %v254_v7 = vpop.permute.xlu0 %253  ;;  %v262_v8 = vpop.permute.xlu1 %261 }
  0xcd   : > { %v256_v9 = vadd.f32 %v254_v7, %v252_v6 }
  0xcf   : > { %v260_v10 = vadd.f32 %v258_v5, %v256_v9 }
  0xd0   : > { %v266_v11 = vpop.permute.xlu0 %265  ;;  %v270_v13 = vpop.permute.xlu1 %269 }
  0xd1   : > { %v264_v12 = vadd.f32 %v262_v8, %v260_v10 }
  0xd3   : > { %v268_v14 = vadd.f32 %v266_v11, %v264_v12 }
  0xd4   : > { %v274_v15 = vpop.permute.xlu0 %273 }
  0xd5   : > { %v272_v16 = vadd.f32 %v270_v13, %v268_v14 }
  0xd7   : > { %v276_v17 = vadd.f32 %v274_v15, %v272_v16 }
  0xd9   : > { %277 = vst.msk [vmem:[#allocation5] sm:$0xff] %vm240_vm1, %v276_v17 }
  0xda PF: > { %v935_v18 = vld [vmem:[%s1281_s22 + $0x78] sm:$0xff]   ;;  %v937_v20 = vld [vmem:[%s1281_s22 + $0x70] sm:$0xff]   ;;  %v939_v22 = vld [vmem:[%s1281_s22 + $0x68] sm:$0xff]   ;;  %vm492_vm2 = vcmp.ne.s32.totalorder %v1291_v0, 0  ;;  %v1142_v35 = vmov 0   ;;  %v1143_v37 = vmov 1   ;;  %v449_v42 = vlaneseq }
  0xdb   : > { %v936_v19 = vld [vmem:[%s1281_s22 + $0x38] sm:$0xff]   ;;  %800 = vmatprep.subr.bf16.mxu0 %v935_v18  ;;  %v938_v21 = vld [vmem:[%s1281_s22 + $0x30] sm:$0xff]   ;;  %v940_v23 = vld [vmem:[%s1281_s22 + $0x28] sm:$0xff]   ;;  %923 = vset.pattern.permute.xlu1 %v1142_v35  ;;  %v493_v36 = vsel %vm492_vm2, 1, %v1142_v35  ;;  %v1144_v38 = vmov 2   ;;  %v1145_v39 = vmov 3  }
  0xdc   : > { %801 = vmatpush3.bf16.xpose.msra.mxu0 %v936_v19  ;;  %v941_v24 = vld [vmem:[%s1281_s22 + $0x60] sm:$0xff]   ;;  %v278_v25 = vld [vmem:[#allocation6] sm:$0xf]  ;;  %v945_v29 = vld [vmem:[%s1281_s22 + $0x50] sm:$0xff]   ;;  %922 = vset.pattern.permute.xlu0 %v1142_v35  ;;  %v1146_v40 = vmov 4   ;;  %v1147_v41 = vmov 5  }
  0xdd   : > { %802 = vmatprep.subr.bf16.mxu0 %v937_v20  ;;  %816 = vmatprep.mubr.bf16.mxu0 %v278_v25  ;;  %v942_v26 = vld [vmem:[%s1281_s22 + $0x20] sm:$0xff]   ;;  %v943_v27 = vld [vmem:[%s1281_s22 + $0x58] sm:$0xff]   ;;  %v946_v30 = vld [vmem:[%s1281_s22 + $0x10] sm:$0xff]   ;;  %v450_v43 = vand.u32 127, %v449_v42  ;;  %s777_s29 = sshll.u32 %s1118_s15, 8  ;;  %v1148_v55 = vmov 6  }
  0xde   : > { %v944_v28 = vld [vmem:[%s1281_s22 + $0x18] sm:$0xff]   ;;  %v947_v31 = vld [vmem:[%s1281_s22 + $0x48] sm:$0xff]   ;;  %v949_v33 = vld [vmem:[%s1281_s22 + $0x40] sm:$0xff]   ;;  %495 = vperm.xlu1 %923, %v493_v36   ;;  %v452_v45 = vstv %s777_s29  ;;  %v1149_v56 = vmov 7   ;;  %vm484_vm5 = vcmask 7168   ;;  %v1150_v8 = vmov 0.0  }
  0xdf   : > { %v948_v32 = vld [vmem:[%s1281_s22 + $0x8] sm:$0xff]   ;;  %v950_v34 = vld [vmem:[%s1281_s22] sm:$0xff]   ;;  %v451_v44 = vadd.s32 128, %v450_v43  ;;  %v1322_v46 = vadd.s32 %v452_v45, %v450_v43  ;;  %p794_p11 = scmp.ne.s32.totalorder %s1118_s15, 1 }
  0xe0   : > { %v1336_v57 = vld [vmem:[#allocation2] sm:$0xff] }
  0xe1   : > { %v1324_v47 = vadd.s32 %v452_v45, %v451_v44  ;;  %vm455_vm3 = vcmp.lt.s32.totalorder %v1322_v46, 512 }
  0xe2   : > { %924 = vset.pattern.permute.xlu1 %v1143_v37 }
  0xe3   : > { %507 = vperm.xlu1 %924, %v1291_v0   ;;  %vm456_vm4 = vcmp.lt.s32.totalorder %v1324_v47, 512 }
  0xe4   : > { %803 = vmatpush3.bf16.xpose.msra.mxu0 %v938_v21 }
  0xe5   : > { %804 = vmatprep.subr.bf16.mxu0 %v939_v22 }
  0xe7   : > { %512 = vperm.xlu1 %924, %v493_v36  }
  0xeb   : > { %925 = vset.pattern.permute.xlu1 %v1144_v38 }
  0xec   : > { %805 = vmatpush3.bf16.xpose.msra.mxu0 %v940_v23  ;;  %524 = vperm.xlu1 %925, %v1291_v0  }
  0xed   : > { %806 = vmatprep.subr.bf16.mxu0 %v941_v24 }
  0xf0   : > { %529 = vperm.xlu1 %925, %v493_v36  }
  0xf4   : > { %807 = vmatpush3.bf16.xpose.msra.mxu0 %v942_v26  ;;  %926 = vset.pattern.permute.xlu1 %v1145_v39 }
  0xf5   : > { %808 = vmatprep.subr.bf16.mxu0 %v943_v27  ;;  %541 = vperm.xlu1 %926, %v1291_v0  }
  0xf9   : > { %546 = vperm.xlu1 %926, %v493_v36  }
  0xfc   : > { %809 = vmatpush3.bf16.xpose.msra.mxu0 %v944_v28 }
  0xfd   : > { %810 = vmatprep.subr.bf16.mxu0 %v945_v29  ;;  %927 = vset.pattern.permute.xlu1 %v1146_v40 }
  0xfe   : > { %558 = vperm.xlu1 %927, %v1291_v0  }
 0x102   : > { %563 = vperm.xlu1 %927, %v493_v36  }
 0x104   : > { %811 = vmatpush3.bf16.xpose.msra.mxu0 %v946_v30 }
 0x105   : > { %812 = vmatprep.subr.bf16.mxu0 %v947_v31 }
 0x106   : > { %928 = vset.pattern.permute.xlu1 %v1147_v41 }
 0x107   : > { %575 = vperm.xlu1 %928, %v1291_v0  }
 0x10b   : > { %929 = vset.pattern.permute.xlu1 %v1142_v35 }
 0x10c   : > { %813 = vmatpush3.bf16.xpose.msra.mxu0 %v948_v32 }
 0x10d   : > { %814 = vmatprep.subr.bf16.mxu0 %v949_v33 }
 0x114   : > { %815 = vmatpush3.bf16.xpose.msra.mxu0 %v950_v34 }
 0x11b   : > { %817 = vmatmul.mubr.bf16.vlgmr.msra.gmra.mxu0 %v278_v25 }
 0x159   : > { %v496_v61 = vpop.permute.xlu1 %495 }
 0x15a   : > { %vm497_vm9 = vcmp.eq.s32.totalorder %v496_v61, 1 }
 0x15e   : > { %v508_v62 = vpop.permute.xlu1 %507 }
 0x15f   : > { %vm509_vm6 = vcmp.eq.s32.totalorder %v1322_v46, %v508_v62  ;;  %vm510_vm8 = vcmp.eq.s32.totalorder %v1324_v47, %v508_v62  ;;  %v464_v62 = vld [vmem:[#allocation3] sm:$0xff] }
 0x162   : > { %v513_v63 = vpop.permute.xlu1 %512 }
 0x163   : > { %vm514_vm7 = vcmp.eq.s32.totalorder %v513_v63, 1 }
 0x164   : > { %vm515_vm11 = vmand %vm509_vm6, %vm514_vm7 }
 0x165   : > { %vm516_vm13 = vmand %vm510_vm8, %vm514_vm7  ;;  %v780_v9 = vsel %vm515_vm11, 1.0, %v1150_v8 }
 0x166   : > { %v781_v11 = vsel %vm516_vm13, 1.0, %v1150_v8 }
 0x167   : > { %v525_v1 = vpop.permute.xlu1 %524 }
 0x168   : > { %vm526_vm15 = vcmp.eq.s32.totalorder %v1322_v46, %v525_v1  ;;  %vm527_vm2 = vcmp.eq.s32.totalorder %v1324_v47, %v525_v1 }
 0x16b   : > { %v530_v2 = vpop.permute.xlu1 %529 }
 0x16c   : > { %vm531_vm0 = vcmp.eq.s32.totalorder %v530_v2, 1 }
 0x170   : > { %v542_v3 = vpop.permute.xlu1 %541 }
 0x171   : > { %vm543_vm6 = vcmp.eq.s32.totalorder %v1322_v46, %v542_v3  ;;  %vm544_vm8 = vcmp.eq.s32.totalorder %v1324_v47, %v542_v3  ;;  %v625_v3 = vld [vmem:[#allocation4] sm:$0xff] }
 0x174   : > { %v547_v4 = vpop.permute.xlu1 %546 }
 0x175   : > { %vm548_vm7 = vcmp.eq.s32.totalorder %v547_v4, 1 }
 0x179   : > { %v559_v5 = vpop.permute.xlu1 %558 }
 0x17a   : > { %vm560_vm11 = vcmp.eq.s32.totalorder %v1322_v46, %v559_v5  ;;  %vm561_vm13 = vcmp.eq.s32.totalorder %v1324_v47, %v559_v5 }
 0x17d   : > { %v564_v7 = vpop.permute.xlu1 %563 }
 0x1db   : > { %v441_v48 = vpop.f32.mrf.mxu0 }
 0x1dc   : > { %v1328_v50 = vsel %vm455_vm3, %v441_v48, -1e+30  ;;  %vm532_vm3 = vmand %vm526_vm15, %vm531_vm0 }
 0x1dd   : > { %v443_v49 = vpop.f32.mrf.mxu0  ;;  %v782_v17 = vsel %vm532_vm3, 1.0, %v1150_v8 }
 0x1de   : > { %v1330_v51 = vsel %vm456_vm4, %v443_v49, -1e+30  ;;  %vm533_vm4 = vmand %vm527_vm2, %vm531_vm0 }
 0x1df   : > { %v445_v52 = vpop.f32.mrf.mxu0  ;;  %v460_v53 = vmax.f32 %v1328_v50, %v1330_v51  ;;  %v783_v19 = vsel %vm533_vm4, 1.0, %v1150_v8 }
 0x1e1   : > { %461 = vmax.xlane.f32.xlu0 %v460_v53  ;;  %v446_v54 = vpop.f32.mrf.mxu0 }
 0x1f7   : > { %488 = vperm.xlu0 %922, %v1291_v0  }
 0x1fb   : > { %931 = vset.pattern.permute.xlu0 %v1148_v55 }
 0x1fc   : > { %592 = vperm.xlu0 %931, %v1291_v0  }
 0x200   : > { %934 = vset.pattern.permute.xlu0 %v1149_v56 }
 0x201   : > { %614 = vperm.xlu0 %934, %v493_v36  }
 0x26a   : > { %v462_v58 = vpop.xlane.xlu0 %461 }
 0x26b   : > { %v1339_v59 = vmax.f32 %v1336_v57, %v462_v58 }
 0x26d   : > { %v465_v60 = vsub.f32 %v1336_v57, %v1339_v59  ;;  %486 = vst.msk [vmem:[#allocation2] sm:$0xff] %vm484_vm5, %v1339_v59  ;;  %471 = vperm.xlu1 %929, %v1339_v59  }
 0x271   : > { %930 = vset.pattern.permute.xlu1 %v1147_v41 }
 0x272   : > { %580 = vperm.xlu1 %930, %v493_v36   ;;  %v489_v6 = vpop.permute.xlu0 %488 }
 0x273   : > { %vm490_vm10 = vcmp.eq.s32.totalorder %v1322_v46, %v489_v6  ;;  %vm491_vm12 = vcmp.eq.s32.totalorder %v1324_v47, %v489_v6 }
 0x274   : > { %vm498_vm14 = vmand %vm490_vm10, %vm497_vm9 }
 0x275   : > { %vm499_vm1 = vmand %vm491_vm12, %vm497_vm9  ;;  %v778_v10 = vsel %vm498_vm14, 1.0, %v1150_v8  ;;  %vm565_vm12 = vcmp.eq.s32.totalorder %v564_v7, 1 }
 0x276   : > { %932 = vset.pattern.permute.xlu1 %v1148_v55  ;;  %v779_v12 = vsel %vm499_vm1, 1.0, %v1150_v8  ;;  %v521_v14 = vadd.f32 %v780_v9, %v778_v10  ;;  %vm549_vm9 = vmand %vm543_vm6, %vm548_vm7 }
 0x277   : > { %597 = vperm.xlu1 %932, %v493_v36   ;;  %v522_v18 = vadd.f32 %v781_v11, %v779_v12  ;;  %vm550_vm10 = vmand %vm544_vm8, %vm548_vm7  ;;  %v593_v24 = vpop.permute.xlu0 %592  ;;  %v784_v25 = vsel %vm549_vm9, 1.0, %v1150_v8 }
 0x278   : > { %v538_v22 = vadd.f32 %v782_v17, %v521_v14  ;;  %v785_v27 = vsel %vm550_vm10, 1.0, %v1150_v8  ;;  %vm566_vm15 = vmand %vm560_vm11, %vm565_vm12  ;;  %vm594_vm4 = vcmp.eq.s32.totalorder %v1322_v46, %v593_v24  ;;  %vm595_vm7 = vcmp.eq.s32.totalorder %v1324_v47, %v593_v24 }
 0x279   : > { %v539_v26 = vadd.f32 %v783_v19, %v522_v18  ;;  %vm567_vm0 = vmand %vm561_vm13, %vm565_vm12  ;;  %v786_v30 = vsel %vm566_vm15, 1.0, %v1150_v8 }
 0x27a   : > { %v555_v28 = vadd.f32 %v784_v25, %v538_v22  ;;  %v787_v32 = vsel %vm567_vm0, 1.0, %v1150_v8 }
 0x27b   : > { %933 = vset.pattern.permute.xlu1 %v1149_v56  ;;  %v556_v29 = vadd.f32 %v785_v27, %v539_v26 }
 0x27c   : > { %609 = vperm.xlu1 %933, %v1291_v0   ;;  %v576_v0 = vpop.permute.xlu1 %575  ;;  %v615_v33 = vpop.permute.xlu0 %614  ;;  %v572_v35 = vadd.f32 %v786_v30, %v555_v28 }
 0x27d   : > { %vm577_vm1 = vcmp.eq.s32.totalorder %v1322_v46, %v576_v0  ;;  %vm578_vm2 = vcmp.eq.s32.totalorder %v1324_v47, %v576_v0  ;;  %v573_v37 = vadd.f32 %v787_v32, %v556_v29  ;;  %vm616_vm11 = vcmp.eq.s32.totalorder %v615_v33, 1 }
 0x2e8   : > { %v472_v13 = vpop.permute.xlu1 %471 }
 0x2e9   : > { %v474_v15 = vsub.f32 %v1328_v50, %v472_v13  ;;  %v475_v16 = vsub.f32 %v1330_v51, %v472_v13 }
 0x2eb   : > { %v476_v20 = vmul.f32 1.442695, %v474_v15  ;;  %v478_v21 = vmul.f32 1.442695, %v475_v16 }
 0x2ed   : > { %951 = vpow2.f32 %v476_v20  ;;  %v581_v23 = vpop.permute.xlu1 %580 }
 0x2ee   : > { %953 = vpow2.f32 %v478_v21  ;;  %vm582_vm14 = vcmp.eq.s32.totalorder %v581_v23, 1 }
 0x2ef   : > { %vm583_vm3 = vmand %vm577_vm1, %vm582_vm14 }
 0x2f0   : > { %vm584_vm6 = vmand %vm578_vm2, %vm582_vm14  ;;  %v788_v34 = vsel %vm583_vm3, 1.0, %v1150_v8 }
 0x2f1   : > { %v789_v36 = vsel %vm584_vm6, 1.0, %v1150_v8  ;;  %v589_v39 = vadd.f32 %v788_v34, %v572_v35 }
 0x2f2   : > { %v598_v31 = vpop.permute.xlu1 %597  ;;  %v590_v42 = vadd.f32 %v789_v36, %v573_v37 }
 0x2f3   : > { %vm599_vm8 = vcmp.eq.s32.totalorder %v598_v31, 1 }
 0x2f4   : > { %vm600_vm9 = vmand %vm594_vm4, %vm599_vm8 }
 0x2f5   : > { %vm601_vm10 = vmand %vm595_vm7, %vm599_vm8  ;;  %v790_v38 = vsel %vm600_vm9, 1.0, %v1150_v8 }
 0x2f6   : > { %v791_v40 = vsel %vm601_vm10, 1.0, %v1150_v8  ;;  %v606_v43 = vadd.f32 %v790_v38, %v589_v39 }
 0x2f7   : > { %v610_v41 = vpop.permute.xlu1 %609  ;;  %v607_v45 = vadd.f32 %v791_v40, %v590_v42 }
 0x2f8   : > { %vm611_vm12 = vcmp.eq.s32.totalorder %v1322_v46, %v610_v41  ;;  %vm612_vm13 = vcmp.eq.s32.totalorder %v1324_v47, %v610_v41  ;;  %v466_v47 = vmul.f32 1.442695, %v465_v60 }
 0x2f9   : > { %vm617_vm14 = vmand %vm611_vm12, %vm616_vm11 }
 0x2fa   : > { %v952_v44 = vpop.eup %951  ;;  %vm618_vm15 = vmand %vm612_vm13, %vm616_vm11  ;;  %v792_v48 = vsel %vm617_vm14, 1.0, %v1150_v8  ;;  %955 = vpow2.f32 %v466_v47 }
 0x2fb   : > { %v954_v49 = vpop.eup %953  ;;  %v793_v52 = vsel %vm618_vm15, 1.0, %v1150_v8  ;;  %v623_v53 = vadd.f32 %v792_v48, %v606_v43 }
 0x2fc   : > { %v624_v54 = vadd.f32 %v793_v52, %v607_v45  ;;  %v480_v55 = vadd.f32 %v954_v49, %v952_v44 }
 0x2fd   : > { %v626_v56 = vmul.f32 %v623_v53, %v1328_v50 }
 0x2fe   : > { %481 = vadd.xlane.f32.xlu1 %v480_v55  ;;  %v627_v46 = vmul.f32 %v624_v54, %v1330_v51 }
 0x300   : > { %v628_v58 = vadd.f32 %v627_v46, %v626_v56 }
 0x302   : > { %629 = vadd.xlane.f32.xlu0 %v628_v58 }
 0x307   : > { %v956_v61 = vpop.eup %955 }
 0x308   : > { %v468_v63 = vmul.f32 %v956_v61, %v464_v62 }
 0x387   : > { %v482_v1 = vpop.xlane.xlu1 %481 }
 0x388   : > { %v483_v2 = vadd.f32 %v482_v1, %v468_v63 }
 0x38a   : > { %485 = vst.msk [vmem:[#allocation3] sm:$0xff] %vm484_vm5, %v483_v2  ;;  %636 = sbr.rel (%p794_p11) target bundleno = 1061 (0x425), region = 52 }
 0x38b   : > { %v630_v4 = vpop.xlane.xlu0 %629 }
 0x38c   : > { %v631_v50 = vadd.f32 %v630_v4, %v625_v3 }
 0x38e   : > { %632 = vst.msk [vmem:[#allocation4] sm:$0xff] %vm484_vm5, %v631_v50 }
 0x38f   : > { %v1151_v5 = vmov 0   ;;  %v637_v59 = vld [vmem:[#allocation2] sm:$0xff]  ;;  %v643_v6 = vld [vmem:[#allocation5] sm:$0xff] }
 0x390   : > { %957 = vset.pattern.permute.xlu0 %v1151_v5 }
 0x391   : > { %v638_v51 = vld [vmem:[#allocation3] sm:$0xff] }
 0x392   : > { %958 = vlog2.f32 %v638_v51 }
 0x395   : > { %v642_v0 = vld [vmem:[#allocation4] sm:$0xff] }
 0x39f   : > { %v959_v57 = vpop.eup %958 }
 0x3a0   : > { %v640_v60 = vmul.f32 0.6931472, %v959_v57 }
 0x3a2   : > { %v641_v7 = vadd.f32 %v640_v60, %v637_v59 }
 0x3a4   : > { %v644_v8 = vmul.f32 %v643_v6, %v641_v7 }
 0x3a6   : > { %v645_v9 = vsub.f32 %v642_v0, %v644_v8 }
 0x3a8   : > { %648 = vperm.xlu0 %957, %v645_v9  }
 0x423   : > { %v649_v10 = vpop.permute.xlu0 %648 }
 0x424   : > { %651 = vst [vmem:[#allocation12] sm:$0xff] %v649_v10 }
 0x425 PF: > { %p848_p13 = scmp.eq.s32.totalorder %s1202_s18, 1  ;;  %s1152_s15 = smov [#allocation12]  }
 0x426   : > { %s661_s30 = sshll.u32 %s1152_s15, 4  ;;  %s662_s30 = int_to_ptr.vmem [resolvable:$true] %s661_s30 }
 0x427   : > { %s1040_s4 = scalar_lea.vmem %s662_s30, 128  ;;  %p1047_p4 = scmp.lt.s32.totalorder %s662_s30, %s662_s30 }
 0x428   : > { %p1041_p2 = scmp.ne.s32.totalorder %s662_s30, %s1040_s4  ;;  %p1048_p10 = scmp.lt.s32.totalorder %s1040_s4, %s1040_s4 }
 0x42a   : > { %p1042_p7 = pnand %p1041_p2, %p848_p13  ;;  %p1049_p0 = por %p1048_p10, %p1047_p4 }
 0x42c   : > { %p1043_p9 = pneg %p1042_p7 }
 0x42e   : > { %p1050_p1 = pnand %p1049_p0, %p1043_p9 }
 0x430   : > { %1053 = shalt.err (!%p1050_p1)
}
 0x431   : > { %829 = dma.vmem_to_hbm [thread:$0]  (%p848_p13), %s662_s30, 128, %s1422_s3, [#allocation8]  }
 0x432   : > { %1101 = dma.done.wait (%p848_p13), [#allocation8], 128  }
 0x433   : > { %1103 = vsyncadd (%p848_p13), [#allocation8], 4294967168 }
 0x434 PF: > { %s18_s17 = sadd.s32 1, %s1126_s17   ;;  %s1436_s12 = smov %s1110_s13 }
 0x435   : > { %p15_p5 = scmp.ge.s32.totalorder %s18_s17, 4   ;;  %s1437_s13 = smov %s1114_s14 }
 0x436   : > { %s1438_s14 = smov %s1267_s27  ;;  %s1439_s15 = smov %s1122_s16 }
 0x437   : > { %s1440_s16 = smov %s1442_s8  ;;  %17 = sbr.rel (!%p15_p5) target bundleno = 6 (0x6), region = 89 }
 0x43c   :  { %674 = vsyncpa [#allocation7], 1 }
 0x43d   :  { %676 = vsyncpa [#allocation7 + $0x1], 1 }
 0x43e   :  { %677 = vsyncpa [#allocation10], 1 }
 0x43f   :  { %679 = vsyncpa [#allocation10 + $0x1], 1 }
 0x440   :  { %680 = vsyncpa [#allocation8], 1 }
 0x441   :  { %682 = vsyncpa [#allocation8 + $0x1], 1 }

</bundles_post_ra>
